<compile_context>
chip_gen: v7x
topology: tpu7x:2x2x1
jax: 0.10.0
libtpu: 0.0.40
codegen_flags: <defaults>
</compile_context>

<pallas_src>
from functools import partial
from typing import NamedTuple

import numpy as np
import jax
import jax.numpy as jnp
from jax import lax
from jax.experimental import pallas as pl
from jax.experimental.pallas import tpu as pltpu

_LANES = 128


def _round_up(n: int, m: int) -> int:
    return ((n + m - 1) // m) * m


class SlabOffsets(NamedTuple):
    w1v: int
    w1m: int
    w1n: int
    b1: int
    we1: int
    be1: int
    we2: int
    be2: int
    w2v: int
    w2m: int
    w2n: int
    w2s: int
    b2: int


class TaskEncoderCfg(NamedTuple):
    task_dim: int
    num_class: int
    emb_size: int
    feat_num: int
    max_shot: int
    d_pad: int
    s_pad: int
    v_pad: int
    c_pad: int
    out_lanes: int
    tile_n: int
    offsets: SlabOffsets


# --------------------------------------------------------------------------
# Kernel
# --------------------------------------------------------------------------
def _task_encoder_kernel(y_ref, x_ref, slab_ref, out_ref,
                         cnt_acc, sum_acc, sq_acc, *,
                         Dp, Sp, Vp, Cp, out_lanes, max_shot, offs, use_bf16):
    i = pl.program_id(0)

    # ---- init accumulators on the first tile --------------------------------
    @pl.when(i == 0)
    def _init():
        cnt_acc[...] = jnp.zeros_like(cnt_acc)
        sum_acc[...] = jnp.zeros_like(sum_acc)
        sq_acc[...] = jnp.zeros_like(sq_acc)

    # ---- per-tile statistic pooling (runs every grid step) ------------------
    y_tile = y_ref[...]                                      # (1, TN) int32
    tn = y_tile.shape[1]
    cls = lax.broadcasted_iota(jnp.int32, (Cp, tn), 0)       # class id per row
    mask = (y_tile == cls).astype(jnp.float32)               # (Cp, TN) one-hot
    cnt_acc[...] += jnp.sum(mask, axis=1, keepdims=True)     # (Cp, 1)

    x_tile = x_ref[...]                                      # (TN, Dp)
    if use_bf16:
        x32 = x_tile.astype(jnp.float32)
        xsq = x32 * x32                                      # square in f32
        mask_mm = mask.astype(jnp.bfloat16)
        x_mm = x_tile                                        # already bf16
        xsq_mm = xsq.astype(jnp.bfloat16)
    else:
        xsq = x_tile * x_tile
        mask_mm, x_mm, xsq_mm = mask, x_tile, xsq

    sum_acc[...] += jnp.dot(mask_mm, x_mm, preferred_element_type=jnp.float32)
    sq_acc[...] += jnp.dot(mask_mm, xsq_mm, preferred_element_type=jnp.float32)

    # ---- epilogue on the last tile ------------------------------------------
    @pl.when(i == pl.num_programs(0) - 1)
    def _epilogue():
        f32 = jnp.float32
        cnt = cnt_acc[...]                                   # (Cp, 1)
        present = (cnt > 0.0).astype(f32)                    # (Cp, 1)
        n_present = jnp.sum(present, axis=0, keepdims=True)  # (1, 1)

        # per-class mean / unbiased variance (narrow divides + broadcasts)
        inv_cnt = 1.0 / jnp.maximum(cnt, 1.0)
        inv_cm1 = 1.0 / jnp.maximum(cnt - 1.0, 1.0)
        mean = sum_acc[...] * inv_cnt                        # (Cp, Dp)
        ssd = jnp.maximum(sq_acc[...] - cnt * mean * mean, 0.0)
        var = jnp.where(cnt > 1.0, ssd * inv_cm1, jnp.zeros_like(ssd))
        n_c = (cnt - 1.0) * (1.0 / float(max_shot - 1))      # (Cp, 1)

        # s = ReLU(var @ w1_var + mean @ w1_mean + N_c * w1_n + b1)
        w1v = slab_ref[offs.w1v:offs.w1v + Dp, :Sp]
        w1m = slab_ref[offs.w1m:offs.w1m + Dp, :Sp]
        w1n = slab_ref[offs.w1n:offs.w1n + 1, :Sp]
        b1 = slab_ref[offs.b1:offs.b1 + 1, :Sp]
        s = jnp.maximum(
            jnp.dot(var, w1v, preferred_element_type=f32)
            + jnp.dot(mean, w1m, preferred_element_type=f32)
            + n_c * w1n + b1, 0.0)                           # (Cp, Sp)

        # v = en_layer(s): Linear -> ReLU -> Linear
        we1 = slab_ref[offs.we1:offs.we1 + Sp, :Vp]
        be1 = slab_ref[offs.be1:offs.be1 + 1, :Vp]
        we2 = slab_ref[offs.we2:offs.we2 + Vp, :Vp]
        be2 = slab_ref[offs.be2:offs.be2 + 1, :Vp]
        h = jnp.maximum(jnp.dot(s, we1, preferred_element_type=f32) + be1, 0.0)
        v = jnp.dot(h, we2, preferred_element_type=f32) + be2     # (Cp, Vp)

        # statistic pooling over the PRESENT classes only
        inv_np = 1.0 / jnp.maximum(n_present, 1.0)
        v_mean = jnp.sum(present * v, axis=0, keepdims=True) * inv_np   # (1, Vp)
        dv = v - v_mean
        v_var_num = jnp.sum(present * dv * dv, axis=0, keepdims=True)
        v_var = jnp.where(n_present > 1.0,
                          v_var_num / jnp.maximum(n_present - 1.0, 1.0),
                          jnp.zeros_like(v_var_num))                    # (1, Vp)
        v_n = jnp.sum(present * n_c, axis=0, keepdims=True) * inv_np    # (1, 1)

        # pairwise cosine similarity of class means, weighted by the
        # difference of present-class ranks (matches the (j - i) loop).
        inv_norm = 1.0 / jnp.maximum(
            jnp.sqrt(jnp.sum(mean * mean, axis=-1, keepdims=True)), 1e-7)
        mean_norm = mean * inv_norm                                     # (Cp, Dp)

        def outer(a, b):  # (Cp,K) x (Cp,K) -> (Cp,Cp), no transposes
            return lax.dot_general(a, b, (((1,), (1,)), ((), ())),
                                   preferred_element_type=f32)

        cos = outer(mean_norm, mean_norm)                               # (Cp, Cp)
        lower = (lax.broadcasted_iota(jnp.int32, (Cp, Cp), 1)
                 < lax.broadcasted_iota(jnp.int32, (Cp, Cp), 0)).astype(f32)
        rank = jnp.dot(lower, present, preferred_element_type=f32)      # (Cp, 1)
        ones_c = jnp.ones_like(present)
        wmat = outer(present, present) * jnp.maximum(
            outer(ones_c, rank) - outer(rank, ones_c), 0.0)             # (Cp, Cp)
        sim = jnp.sum(wmat * cos, axis=1, keepdims=True)                # (Cp, 1)
        sim_sum = jnp.sum(sim, axis=0, keepdims=True)                   # (1, 1)

        # final projection; output columns >= task_dim are zero-padded weights,
        # so the store is a full lane-dense (1, 128) store.
        w2v = slab_ref[offs.w2v:offs.w2v + Vp, :out_lanes]
        w2m = slab_ref[offs.w2m:offs.w2m + Vp, :out_lanes]
        w2n = slab_ref[offs.w2n:offs.w2n + 1, :out_lanes]
        w2s = slab_ref[offs.w2s:offs.w2s + 1, :out_lanes]
        b2 = slab_ref[offs.b2:offs.b2 + 1, :out_lanes]
        out = (jnp.dot(v_var, w2v, preferred_element_type=f32)
               + jnp.dot(v_mean, w2m, preferred_element_type=f32)
               + v_n * w2n + sim_sum * w2s + b2)
        out_ref[...] = jnp.maximum(out, 0.0)


# --------------------------------------------------------------------------
# Parameter construction / packing
# --------------------------------------------------------------------------
def init_params(key, task_dim, num_class, emb_size, feat_num):
    """nn.Linear-style init; weights stored as (in, out)."""
    D = feat_num * emb_size
    S = emb_size
    V = emb_size // 2

    def lin(k, fin, fout):
        kw, kb = jax.random.split(k)
        lim = 1.0 / float(np.sqrt(fin))
        W = jax.random.uniform(kw, (fin, fout), jnp.float32, -lim, lim)
        b = jax.random.uniform(kb, (1, fout), jnp.float32, -lim, lim)
        return W, b

    k1, k2, k3, k4 = jax.random.split(key, 4)
    w1, b1 = lin(k1, 2 * D + 1, S)          # sta_inter_layer
    we1, be1 = lin(k2, S, V)                # en_layer[0]
    we2, be2 = lin(k3, V, V)                # en_layer[2]
    w2, b2 = lin(k4, 2 * V + 2, task_dim)   # sta_inter_layer2
    return dict(w1=w1, b1=b1, we1=we1, be1=be1, we2=we2, be2=be2, w2=w2, b2=b2)


def pack_params(params, *, task_dim, num_class, emb_size, feat_num, max_shot,
                tile_n=256):
    """Pack every weight/bias into ONE lane-dense (rows, 128*k) f32 slab.

    Each block is padded to 8-aligned rows/cols (so split var/mean weight
    blocks stay sublane-aligned) and placed at an 8-aligned row offset; the
    final-layer blocks are column-padded to out_lanes (>=128) so the kernel's
    output store is lane-dense.
    """
    D = feat_num * emb_size
    S = emb_size
    V = emb_size // 2
    Dp = _round_up(D, 8)
    Sp = _round_up(S, 8)
    Vp = _round_up(V, 8)
    Cp = max(_round_up(num_class, 8), 8)
    out_lanes = _round_up(task_dim, _LANES)
    slab_lanes = _round_up(max(Sp, Vp, out_lanes), _LANES)
    tile_n = _round_up(max(tile_n, _LANES), _LANES)

    w1 = np.asarray(params["w1"], np.float32)    # (2D+1, S)
    b1 = np.asarray(params["b1"], np.float32)
    we1 = np.asarray(params["we1"], np.float32)  # (S, V)
    be1 = np.asarray(params["be1"], np.float32)
    we2 = np.asarray(params["we2"], np.float32)  # (V, V)
    be2 = np.asarray(params["be2"], np.float32)
    w2 = np.asarray(params["w2"], np.float32)    # (2V+2, task_dim)
    b2 = np.asarray(params["b2"], np.float32)

    def padded(arr, rows, cols):
        out = np.zeros((rows, cols), np.float32)
        out[:arr.shape[0], :arr.shape[1]] = arr
        return out

    blocks = [
        ("w1v", padded(w1[:D], Dp, Sp)),
        ("w1m", padded(w1[D:2 * D], Dp, Sp)),
        ("w1n", padded(w1[2 * D:2 * D + 1], 8, Sp)),
        ("b1", padded(b1, 8, Sp)),
        ("we1", padded(we1, Sp, Vp)),
        ("be1", padded(be1, 8, Vp)),
        ("we2", padded(we2, Vp, Vp)),
        ("be2", padded(be2, 8, Vp)),
        ("w2v", padded(w2[:V], Vp, out_lanes)),
        ("w2m", padded(w2[V:2 * V], Vp, out_lanes)),
        ("w2n", padded(w2[2 * V:2 * V + 1], 8, out_lanes)),
        ("w2s", padded(w2[2 * V + 1:2 * V + 2], 8, out_lanes)),
        ("b2", padded(b2, 8, out_lanes)),
    ]
    offsets = {}
    row = 0
    for name, arr in blocks:
        offsets[name] = row
        row += arr.shape[0]
    slab_rows = _round_up(max(row, 8), 8)
    slab = np.zeros((slab_rows, slab_lanes), np.float32)
    for name, arr in blocks:
        r = offsets[name]
        slab[r:r + arr.shape[0], :arr.shape[1]] = arr

    cfg = TaskEncoderCfg(task_dim=task_dim, num_class=num_class,
                         emb_size=emb_size, feat_num=feat_num,
                         max_shot=max_shot, d_pad=Dp, s_pad=Sp, v_pad=Vp,
                         c_pad=Cp, out_lanes=out_lanes, tile_n=tile_n,
                         offsets=SlabOffsets(**offsets))
    return jnp.asarray(slab), cfg


# --------------------------------------------------------------------------
# Forward wrapper
# --------------------------------------------------------------------------
@partial(jax.jit, static_argnames=("cfg", "use_bf16_pooling"))
def task_encoder_forward(slab, x, y, *, cfg: TaskEncoderCfg,
                         use_bf16_pooling: bool = False):
    """TaskEncoder.forward(x, y) -> (task_dim,); fully static shapes."""
    D = cfg.feat_num * cfg.emb_size
    Dp, Sp, Vp, Cp = cfg.d_pad, cfg.s_pad, cfg.v_pad, cfg.c_pad
    N = x.shape[0]
    TN = cfg.tile_n
    Np = _round_up(max(N, TN), TN)
    num_tiles = Np // TN

    xdt = jnp.bfloat16 if use_bf16_pooling else jnp.float32
    # Pad x rows/cols with zeros; pad labels with an out-of-range class (Cp)
    # so padded samples never match any class row of the on-chip mask.
    xp = jnp.zeros((Np, Dp), xdt).at[:N, :D].set(x.astype(xdt))
    yp = jnp.full((1, Np), Cp, jnp.int32).at[0, :N].set(y.astype(jnp.int32))

    kernel = partial(_task_encoder_kernel, Dp=Dp, Sp=Sp, Vp=Vp, Cp=Cp,
                     out_lanes=cfg.out_lanes, max_shot=cfg.max_shot,
                     offs=cfg.offsets, use_bf16=use_bf16_pooling)

    slab_rows, slab_lanes = slab.shape
    # Explicit VMEM budget: double-buffered x/y tiles + slab + accumulators,
    # generous headroom but capped well under v7x's 64 MiB physical VMEM.
    x_bytes = TN * Dp * (2 if use_bf16_pooling else 4)
    est = (slab_rows * slab_lanes * 4 + 2 * (x_bytes + TN * 4)
           + (2 * Cp * Dp + Cp + cfg.out_lanes) * 4)
    vmem_limit = int(min(48 * 1024 * 1024, max(4 * est, 16 * 1024 * 1024)))

    out = pl.pallas_call(
        kernel,
        out_shape=jax.ShapeDtypeStruct((1, cfg.out_lanes), jnp.float32),
        grid=(num_tiles,),
        in_specs=[
            pl.BlockSpec((1, TN), lambda i: (0, i)),            # label tile
            pl.BlockSpec((TN, Dp), lambda i: (i, 0)),           # x tile
            pl.BlockSpec((slab_rows, slab_lanes), lambda i: (0, 0)),  # weights
        ],
        out_specs=pl.BlockSpec((1, cfg.out_lanes), lambda i: (0, 0)),
        scratch_shapes=[
            pltpu.VMEM((Cp, 1), jnp.float32),    # per-class counts
            pltpu.VMEM((Cp, Dp), jnp.float32),   # per-class sums
            pltpu.VMEM((Cp, Dp), jnp.float32),   # per-class sq-sums
        ],
        compiler_params=pltpu.CompilerParams(
            dimension_semantics=("arbitrary",),   # reduction over N tiles
            vmem_limit_bytes=vmem_limit,
        ),
    )(yp, xp, slab)
    return out[0, :cfg.task_dim]


# --------------------------------------------------------------------------
# Independent numpy reference (mirrors the PyTorch module)
# --------------------------------------------------------------------------
def reference_numpy(params, x, y, *, task_dim, num_class, emb_size, feat_num,
                    max_shot):
    x = np.asarray(x, np.float64)
    y = np.asarray(y)
    D = feat_num * emb_size
    V = emb_size // 2
    w1 = np.asarray(params["w1"], np.float64)
    b1 = np.asarray(params["b1"], np.float64)[0]
    we1 = np.asarray(params["we1"], np.float64)
    be1 = np.asarray(params["be1"], np.float64)[0]
    we2 = np.asarray(params["we2"], np.float64)
    be2 = np.asarray(params["be2"], np.float64)[0]
    w2 = np.asarray(params["w2"], np.float64)
    b2 = np.asarray(params["b2"], np.float64)[0]

    s_rows, nc_list, means = [], [], []
    for c in range(num_class):
        m = y == c
        if not m.any():
            continue
        cx = x[m]
        n = cx.shape[0]
        nc = (n - 1.0) / (max_shot - 1.0)
        mean = cx.mean(0)
        var = cx.var(0, ddof=1) if n > 1 else np.zeros(D)
        s_rows.append(np.concatenate([var, mean, [nc]]))
        nc_list.append(nc)
        means.append(mean)

    s = np.maximum(np.stack(s_rows) @ w1 + b1, 0.0)
    h = np.maximum(s @ we1 + be1, 0.0)
    v = h @ we2 + be2
    P = v.shape[0]
    v_mean = v.mean(0)
    v_var = v.var(0, ddof=1) if P > 1 else np.zeros(V)
    v_n = float(np.mean(nc_list))
    mt = np.stack(means)
    norms = np.linalg.norm(mt, axis=-1, keepdims=True)
    mn = mt / np.maximum(norms, 1e-7)
    cos = mn @ mn.T
    sim = 0.0
    for i in range(P):
        for j in range(i + 1, P):
            sim += (j - i) * cos[i, j]
    vfin = np.concatenate([v_var, v_mean, [v_n], [sim]])
    return np.maximum(vfin @ w2 + b2, 0.0)


# --------------------------------------------------------------------------
if __name__ == "__main__":
    task_dim, num_class, emb_size, feat_num, max_shot = 6, 4, 8, 2, 400
    D = feat_num * emb_size

    key = jax.random.PRNGKey(0)
    kp, kx, ky = jax.random.split(key, 3)
    params = init_params(kp, task_dim, num_class, emb_size, feat_num)
    slab, cfg = pack_params(params, task_dim=task_dim, num_class=num_class,
                            emb_size=emb_size, feat_num=feat_num,
                            max_shot=max_shot, tile_n=256)

    # N not a multiple of the tile (exercises padding / masking); class 3 has
    # exactly one sample (exercises the zero-variance branch).
    N = 1000
    y_main = jax.random.randint(ky, (N - 1,), 0, 3, dtype=jnp.int32)
    y = jnp.concatenate([y_main, jnp.array([3], jnp.int32)])
    x = jax.random.normal(kx, (N, D), jnp.float32)

    out = task_encoder_forward(slab, x, y, cfg=cfg)
    jax.block_until_ready(out)
    assert out.shape == (task_dim,)
    assert bool(jnp.all(jnp.isfinite(out)))

    ref = reference_numpy(params, np.asarray(x), np.asarray(y),
                          task_dim=task_dim, num_class=num_class,
                          emb_size=emb_size, feat_num=feat_num,
                          max_shot=max_shot)
    assert np.allclose(np.asarray(out, np.float64), ref, rtol=5e-2, atol=5e-2), \
        (np.asarray(out), ref)

    # bf16 pooling path (MXU-native on v5e/v6e/v7x): compile/run sanity check.
    out_bf16 = task_encoder_forward(slab, x, y, cfg=cfg, use_bf16_pooling=True)
    jax.block_until_ready(out_bf16)
    assert out_bf16.shape == (task_dim,)
    assert bool(jnp.all(jnp.isfinite(out_bf16)))

    print("KERNEL_OK")
</pallas_src>

<mosaic_0001>
module attributes {stable_mosaic.version = 11 : i64} {
  func.func @_task_encoder_kernel(%arg0: i32, %arg1: memref<1x256xi32, #tpu.memory_space<vmem>>, %arg2: memref<256x16xf32, #tpu.memory_space<vmem>>, %arg3: memref<120x128xf32, #tpu.memory_space<vmem>>, %arg4: memref<1x128xf32, #tpu.memory_space<vmem>>, %arg5: memref<8x1xf32, #tpu.memory_space<vmem>>, %arg6: memref<8x16xf32, #tpu.memory_space<vmem>>, %arg7: memref<8x16xf32, #tpu.memory_space<vmem>>) attributes {dimension_semantics = [#tpu.dimension_semantics<arbitrary>], iteration_bounds = array<i64: 4>, scalar_prefetch = 0 : i64, scratch_operands = 3 : i64, tpu.core_type = #tpu.core_type<tc>, window_params = [{transform_indices = @transform_0, window_bounds = array<i64: 1, 256>}, {transform_indices = @transform_1, window_bounds = array<i64: 256, 16>}, {pipeline_mode = #tpu.pipeline_mode<synchronous>, transform_indices = @transform_2, window_bounds = array<i64: 120, 128>}, {pipeline_mode = #tpu.pipeline_mode<synchronous>, transform_indices = @transform_3, window_bounds = array<i64: 1, 128>}]} {
    %c0_i32 = arith.constant 0 : i32
    %0 = arith.cmpi eq, %arg0, %c0_i32 : i32
    %1 = arith.extui %0 : i1 to i32
    %c0_i32_0 = arith.constant 0 : i32
    %2 = arith.cmpi ne, %1, %c0_i32_0 : i32
    scf.if %2 {
      %cst_19 = arith.constant 0.000000e+00 : f32
      %27 = vector.broadcast %cst_19 : f32 to vector<8x1xf32>
      %c0_20 = arith.constant 0 : index
      %c0_21 = arith.constant 0 : index
      %28 = vector.load %arg5[%c0_20, %c0_21] : memref<8x1xf32, #tpu.memory_space<vmem>>, vector<8x1xf32>
      tpu.vector_store %arg5[%c0_20, %c0_21], %27 {strides = array<i32>} : memref<8x1xf32, #tpu.memory_space<vmem>>, vector<8x1xf32>,
      %cst_22 = arith.constant 0.000000e+00 : f32
      %29 = vector.broadcast %cst_22 : f32 to vector<8x16xf32>
      %c0_23 = arith.constant 0 : index
      %c0_24 = arith.constant 0 : index
      %30 = vector.load %arg6[%c0_23, %c0_24] : memref<8x16xf32, #tpu.memory_space<vmem>>, vector<8x16xf32>
      tpu.vector_store %arg6[%c0_23, %c0_24], %29 {strides = array<i32>} : memref<8x16xf32, #tpu.memory_space<vmem>>, vector<8x16xf32>,
      %cst_25 = arith.constant 0.000000e+00 : f32
      %31 = vector.broadcast %cst_25 : f32 to vector<8x16xf32>
      %c0_26 = arith.constant 0 : index
      %c0_27 = arith.constant 0 : index
      %32 = vector.load %arg7[%c0_26, %c0_27] : memref<8x16xf32, #tpu.memory_space<vmem>>, vector<8x16xf32>
      tpu.vector_store %arg7[%c0_26, %c0_27], %31 {strides = array<i32>} : memref<8x16xf32, #tpu.memory_space<vmem>>, vector<8x16xf32>,
    } else {
    }
    %c0 = arith.constant 0 : index
    %c0_1 = arith.constant 0 : index
    %3 = vector.load %arg1[%c0, %c0_1] : memref<1x256xi32, #tpu.memory_space<vmem>>, vector<1x256xi32>
    %4 = tpu.iota {dimensions = array<i32: 0>} : vector<8x256xi32>
    %5 = vector.broadcast %3 : vector<1x256xi32> to vector<8x256xi32>
    %6 = arith.cmpi eq, %5, %4 : vector<8x256xi32>
    %7 = arith.extui %6 : vector<8x256xi1> to vector<8x256xi32>
    %8 = arith.sitofp %7 : vector<8x256xi32> to vector<8x256xf32>
    %c0_2 = arith.constant 0 : index
    %c0_3 = arith.constant 0 : index
    %9 = vector.load %arg5[%c0_2, %c0_3] : memref<8x1xf32, #tpu.memory_space<vmem>>, vector<8x1xf32>
    %cst = arith.constant dense<0.000000e+00> : vector<8xf32>
    %10 = vector.multi_reduction <add>, %8, %cst [1] : vector<8x256xf32> to vector<8xf32>
    %11 = vector.shape_cast %10 : vector<8xf32> to vector<8x1xf32>
    %12 = arith.addf %9, %11 : vector<8x1xf32>
    %c0_4 = arith.constant 0 : index
    %c0_5 = arith.constant 0 : index
    %13 = vector.load %arg5[%c0_4, %c0_5] : memref<8x1xf32, #tpu.memory_space<vmem>>, vector<8x1xf32>
    tpu.vector_store %arg5[%c0_4, %c0_5], %12 {strides = array<i32>} : memref<8x1xf32, #tpu.memory_space<vmem>>, vector<8x1xf32>,
    %c0_6 = arith.constant 0 : index
    %c0_7 = arith.constant 0 : index
    %14 = vector.load %arg2[%c0_6, %c0_7] : memref<256x16xf32, #tpu.memory_space<vmem>>, vector<256x16xf32>
    %15 = arith.mulf %14, %14 : vector<256x16xf32>
    %c0_8 = arith.constant 0 : index
    %c0_9 = arith.constant 0 : index
    %16 = vector.load %arg6[%c0_8, %c0_9] : memref<8x16xf32, #tpu.memory_space<vmem>>, vector<8x16xf32>
    %cst_10 = arith.constant dense<0.000000e+00> : vector<8x16xf32>
    %17 = tpu.matmul %8, %14, %cst_10 {dimension_numbers = #tpu.dot_dimension_numbers<[1], [0], [0], [1], [0, 0, 1, 1], [], []>} : vector<8x256xf32>, vector<256x16xf32>, vector<8x16xf32> -> vector<8x16xf32>
    %18 = arith.addf %16, %17 : vector<8x16xf32>
    %c0_11 = arith.constant 0 : index
    %c0_12 = arith.constant 0 : index
    %19 = vector.load %arg6[%c0_11, %c0_12] : memref<8x16xf32, #tpu.memory_space<vmem>>, vector<8x16xf32>
    tpu.vector_store %arg6[%c0_11, %c0_12], %18 {strides = array<i32>} : memref<8x16xf32, #tpu.memory_space<vmem>>, vector<8x16xf32>,
    %c0_13 = arith.constant 0 : index
    %c0_14 = arith.constant 0 : index
    %20 = vector.load %arg7[%c0_13, %c0_14] : memref<8x16xf32, #tpu.memory_space<vmem>>, vector<8x16xf32>
    %cst_15 = arith.constant dense<0.000000e+00> : vector<8x16xf32>
    %21 = tpu.matmul %8, %15, %cst_15 {dimension_numbers = #tpu.dot_dimension_numbers<[1], [0], [0], [1], [0, 0, 1, 1], [], []>} : vector<8x256xf32>, vector<256x16xf32>, vector<8x16xf32> -> vector<8x16xf32>
    %22 = arith.addf %20, %21 : vector<8x16xf32>
    %c0_16 = arith.constant 0 : index
    %c0_17 = arith.constant 0 : index
    %23 = vector.load %arg7[%c0_16, %c0_17] : memref<8x16xf32, #tpu.memory_space<vmem>>, vector<8x16xf32>
    tpu.vector_store %arg7[%c0_16, %c0_17], %22 {strides = array<i32>} : memref<8x16xf32, #tpu.memory_space<vmem>>, vector<8x16xf32>,
    %c3_i32 = arith.constant 3 : i32
    %24 = arith.cmpi eq, %arg0, %c3_i32 : i32
    %25 = arith.extui %24 : i1 to i32
    %c0_i32_18 = arith.constant 0 : i32
    %26 = arith.cmpi ne, %25, %c0_i32_18 : i32
    scf.if %26 {
      %c0_19 = arith.constant 0 : index
      %c0_20 = arith.constant 0 : index
      %27 = vector.load %arg5[%c0_19, %c0_20] : memref<8x1xf32, #tpu.memory_space<vmem>>, vector<8x1xf32>
      %cst_21 = arith.constant 0.000000e+00 : f32
      %28 = vector.broadcast %cst_21 : f32 to vector<8x1xf32>
      %29 = arith.cmpf ogt, %27, %28 : vector<8x1xf32>
      %30 = arith.extui %29 : vector<8x1xi1> to vector<8x1xi32>
      %31 = arith.sitofp %30 : vector<8x1xi32> to vector<8x1xf32>
      %cst_22 = arith.constant dense<0.000000e+00> : vector<1xf32>
      %32 = vector.multi_reduction <add>, %31, %cst_22 [0] : vector<8x1xf32> to vector<1xf32>
      %33 = vector.shape_cast %32 : vector<1xf32> to vector<1x1xf32>
      %cst_23 = arith.constant 1.000000e+00 : f32
      %34 = vector.broadcast %cst_23 : f32 to vector<8x1xf32>
      %35 = arith.maximumf %27, %34 : vector<8x1xf32>
      %cst_24 = arith.constant 1.000000e+00 : f32
      %36 = vector.broadcast %cst_24 : f32 to vector<8x1xf32>
      %37 = arith.divf %36, %35 : vector<8x1xf32>
      %cst_25 = arith.constant 1.000000e+00 : f32
      %38 = vector.broadcast %cst_25 : f32 to vector<8x1xf32>
      %39 = arith.subf %27, %38 : vector<8x1xf32>
      %cst_26 = arith.constant 1.000000e+00 : f32
      %40 = vector.broadcast %cst_26 : f32 to vector<8x1xf32>
      %41 = arith.maximumf %39, %40 : vector<8x1xf32>
      %cst_27 = arith.constant 1.000000e+00 : f32
      %42 = vector.broadcast %cst_27 : f32 to vector<8x1xf32>
      %43 = arith.divf %42, %41 : vector<8x1xf32>
      %c0_28 = arith.constant 0 : index
      %c0_29 = arith.constant 0 : index
      %44 = vector.load %arg6[%c0_28, %c0_29] : memref<8x16xf32, #tpu.memory_space<vmem>>, vector<8x16xf32>
      %45 = vector.broadcast %37 : vector<8x1xf32> to vector<8x16xf32>
      %46 = arith.mulf %44, %45 : vector<8x16xf32>
      %c0_30 = arith.constant 0 : index
      %c0_31 = arith.constant 0 : index
      %47 = vector.load %arg7[%c0_30, %c0_31] : memref<8x16xf32, #tpu.memory_space<vmem>>, vector<8x16xf32>
      %48 = vector.broadcast %27 : vector<8x1xf32> to vector<8x16xf32>
      %49 = arith.mulf %48, %46 : vector<8x16xf32>
      %50 = arith.mulf %49, %46 : vector<8x16xf32>
      %51 = arith.subf %47, %50 : vector<8x16xf32>
      %cst_32 = arith.constant 0.000000e+00 : f32
      %52 = vector.broadcast %cst_32 : f32 to vector<8x16xf32>
      %53 = arith.maximumf %51, %52 : vector<8x16xf32>
      %cst_33 = arith.constant 1.000000e+00 : f32
      %54 = vector.broadcast %cst_33 : f32 to vector<8x1xf32>
      %55 = arith.cmpf ogt, %27, %54 : vector<8x1xf32>
      %56 = vector.broadcast %43 : vector<8x1xf32> to vector<8x16xf32>
      %57 = arith.mulf %53, %56 : vector<8x16xf32>
      %cst_34 = arith.constant 0.000000e+00 : f32
      %58 = vector.broadcast %cst_34 : f32 to vector<8x16xf32>
      %59 = vector.shape_cast %55 : vector<8x1xi1> to vector<8x1xi1>
      %60 = vector.broadcast %59 : vector<8x1xi1> to vector<8x16xi1>
      %61 = arith.select %60, %57, %58 : vector<8x16xi1>, vector<8x16xf32>
      %cst_35 = arith.constant 1.000000e+00 : f32
      %62 = vector.broadcast %cst_35 : f32 to vector<8x1xf32>
      %63 = arith.subf %27, %62 : vector<8x1xf32>
      %cst_36 = arith.constant 0.00250626565 : f32
      %64 = vector.broadcast %cst_36 : f32 to vector<8x1xf32>
      %65 = arith.mulf %63, %64 : vector<8x1xf32>
      %c0_37 = arith.constant 0 : index
      %c0_38 = arith.constant 0 : index
      %66 = vector.load %arg3[%c0_37, %c0_38] : memref<120x128xf32, #tpu.memory_space<vmem>>, vector<16x8xf32>
      %c16 = arith.constant 16 : index
      %c0_39 = arith.constant 0 : index
      %67 = vector.load %arg3[%c16, %c0_39] : memref<120x128xf32, #tpu.memory_space<vmem>>, vector<16x8xf32>
      %c32 = arith.constant 32 : index
      %c0_40 = arith.constant 0 : index
      %68 = vector.load %arg3[%c32, %c0_40] : memref<120x128xf32, #tpu.memory_space<vmem>>, vector<1x8xf32>
      %c40 = arith.constant 40 : index
      %c0_41 = arith.constant 0 : index
      %69 = vector.load %arg3[%c40, %c0_41] : memref<120x128xf32, #tpu.memory_space<vmem>>, vector<1x8xf32>
      %cst_42 = arith.constant dense<0.000000e+00> : vector<8x8xf32>
      %70 = tpu.matmul %61, %66, %cst_42 {dimension_numbers = #tpu.dot_dimension_numbers<[1], [0], [0], [1], [0, 0, 1, 1], [], []>} : vector<8x16xf32>, vector<16x8xf32>, vector<8x8xf32> -> vector<8x8xf32>
      %cst_43 = arith.constant dense<0.000000e+00> : vector<8x8xf32>
      %71 = tpu.matmul %46, %67, %cst_43 {dimension_numbers = #tpu.dot_dimension_numbers<[1], [0], [0], [1], [0, 0, 1, 1], [], []>} : vector<8x16xf32>, vector<16x8xf32>, vector<8x8xf32> -> vector<8x8xf32>
      %72 = arith.addf %70, %71 : vector<8x8xf32>
      %73 = vector.broadcast %65 : vector<8x1xf32> to vector<8x8xf32>
      %74 = vector.broadcast %68 : vector<1x8xf32> to vector<8x8xf32>
      %75 = arith.mulf %73, %74 : vector<8x8xf32>
      %76 = arith.addf %72, %75 : vector<8x8xf32>
      %77 = vector.broadcast %69 : vector<1x8xf32> to vector<8x8xf32>
      %78 = arith.addf %76, %77 : vector<8x8xf32>
      %cst_44 = arith.constant 0.000000e+00 : f32
      %79 = vector.broadcast %cst_44 : f32 to vector<8x8xf32>
      %80 = arith.maximumf %78, %79 : vector<8x8xf32>
      %c48 = arith.constant 48 : index
      %c0_45 = arith.constant 0 : index
      %81 = vector.load %arg3[%c48, %c0_45] : memref<120x128xf32, #tpu.memory_space<vmem>>, vector<8x8xf32>
      %c56 = arith.constant 56 : index
      %c0_46 = arith.constant 0 : index
      %82 = vector.load %arg3[%c56, %c0_46] : memref<120x128xf32, #tpu.memory_space<vmem>>, vector<1x8xf32>
      %c64 = arith.constant 64 : index
      %c0_47 = arith.constant 0 : index
      %83 = vector.load %arg3[%c64, %c0_47] : memref<120x128xf32, #tpu.memory_space<vmem>>, vector<8x8xf32>
      %c72 = arith.constant 72 : index
      %c0_48 = arith.constant 0 : index
      %84 = vector.load %arg3[%c72, %c0_48] : memref<120x128xf32, #tpu.memory_space<vmem>>, vector<1x8xf32>
      %cst_49 = arith.constant dense<0.000000e+00> : vector<8x8xf32>
      %85 = tpu.matmul %80, %81, %cst_49 {dimension_numbers = #tpu.dot_dimension_numbers<[1], [0], [0], [1], [0, 0, 1, 1], [], []>} : vector<8x8xf32>, vector<8x8xf32>, vector<8x8xf32> -> vector<8x8xf32>
      %86 = vector.broadcast %82 : vector<1x8xf32> to vector<8x8xf32>
      %87 = arith.addf %85, %86 : vector<8x8xf32>
      %cst_50 = arith.constant 0.000000e+00 : f32
      %88 = vector.broadcast %cst_50 : f32 to vector<8x8xf32>
      %89 = arith.maximumf %87, %88 : vector<8x8xf32>
      %cst_51 = arith.constant dense<0.000000e+00> : vector<8x8xf32>
      %90 = tpu.matmul %89, %83, %cst_51 {dimension_numbers = #tpu.dot_dimension_numbers<[1], [0], [0], [1], [0, 0, 1, 1], [], []>} : vector<8x8xf32>, vector<8x8xf32>, vector<8x8xf32> -> vector<8x8xf32>
      %91 = vector.broadcast %84 : vector<1x8xf32> to vector<8x8xf32>
      %92 = arith.addf %90, %91 : vector<8x8xf32>
      %cst_52 = arith.constant 1.000000e+00 : f32
      %93 = vector.broadcast %cst_52 : f32 to vector<1x1xf32>
      %94 = arith.maximumf %33, %93 : vector<1x1xf32>
      %cst_53 = arith.constant 1.000000e+00 : f32
      %95 = vector.broadcast %cst_53 : f32 to vector<1x1xf32>
      %96 = arith.divf %95, %94 : vector<1x1xf32>
      %97 = vector.broadcast %31 : vector<8x1xf32> to vector<8x8xf32>
      %98 = arith.mulf %97, %92 : vector<8x8xf32>
      %cst_54 = arith.constant dense<0.000000e+00> : vector<8xf32>
      %99 = vector.multi_reduction <add>, %98, %cst_54 [0] : vector<8x8xf32> to vector<8xf32>
      %100 = vector.shape_cast %99 : vector<8xf32> to vector<1x8xf32>
      %101 = vector.broadcast %96 : vector<1x1xf32> to vector<1x8xf32>
      %102 = arith.mulf %100, %101 : vector<1x8xf32>
      %103 = vector.broadcast %102 : vector<1x8xf32> to vector<8x8xf32>
      %104 = arith.subf %92, %103 : vector<8x8xf32>
      %105 = vector.broadcast %31 : vector<8x1xf32> to vector<8x8xf32>
      %106 = arith.mulf %105, %104 : vector<8x8xf32>
      %107 = arith.mulf %106, %104 : vector<8x8xf32>
      %cst_55 = arith.constant dense<0.000000e+00> : vector<8xf32>
      %108 = vector.multi_reduction <add>, %107, %cst_55 [0] : vector<8x8xf32> to vector<8xf32>
      %109 = vector.shape_cast %108 : vector<8xf32> to vector<1x8xf32>
      %cst_56 = arith.constant 1.000000e+00 : f32
      %110 = vector.broadcast %cst_56 : f32 to vector<1x1xf32>
      %111 = arith.cmpf ogt, %33, %110 : vector<1x1xf32>
      %cst_57 = arith.constant 1.000000e+00 : f32
      %112 = vector.broadcast %cst_57 : f32 to vector<1x1xf32>
      %113 = arith.subf %33, %112 : vector<1x1xf32>
      %cst_58 = arith.constant 1.000000e+00 : f32
      %114 = vector.broadcast %cst_58 : f32 to vector<1x1xf32>
      %115 = arith.maximumf %113, %114 : vector<1x1xf32>
      %116 = vector.broadcast %115 : vector<1x1xf32> to vector<1x8xf32>
      %117 = arith.divf %109, %116 : vector<1x8xf32>
      %cst_59 = arith.constant 0.000000e+00 : f32
      %118 = vector.broadcast %cst_59 : f32 to vector<1x8xf32>
      %119 = vector.shape_cast %111 : vector<1x1xi1> to vector<1x1xi1>
      %120 = vector.broadcast %119 : vector<1x1xi1> to vector<1x8xi1>
      %121 = arith.select %120, %117, %118 : vector<1x8xi1>, vector<1x8xf32>
      %122 = arith.mulf %31, %65 : vector<8x1xf32>
      %cst_60 = arith.constant dense<0.000000e+00> : vector<1xf32>
      %123 = vector.multi_reduction <add>, %122, %cst_60 [0] : vector<8x1xf32> to vector<1xf32>
      %124 = vector.shape_cast %123 : vector<1xf32> to vector<1x1xf32>
      %125 = arith.mulf %124, %96 : vector<1x1xf32>
      %126 = arith.mulf %46, %46 : vector<8x16xf32>
      %cst_61 = arith.constant dense<0.000000e+00> : vector<8xf32>
      %127 = vector.multi_reduction <add>, %126, %cst_61 [1] : vector<8x16xf32> to vector<8xf32>
      %128 = vector.shape_cast %127 : vector<8xf32> to vector<8x1xf32>
      %129 = math.sqrt %128 : vector<8x1xf32>
      %cst_62 = arith.constant 1.000000e-07 : f32
      %130 = vector.broadcast %cst_62 : f32 to vector<8x1xf32>
      %131 = arith.maximumf %129, %130 : vector<8x1xf32>
      %cst_63 = arith.constant 1.000000e+00 : f32
      %132 = vector.broadcast %cst_63 : f32 to vector<8x1xf32>
      %133 = arith.divf %132, %131 : vector<8x1xf32>
      %134 = vector.broadcast %133 : vector<8x1xf32> to vector<8x16xf32>
      %135 = arith.mulf %46, %134 : vector<8x16xf32>
      %cst_64 = arith.constant dense<0.000000e+00> : vector<8x8xf32>
      %136 = tpu.matmul %135, %135, %cst_64 {dimension_numbers = #tpu.dot_dimension_numbers<[1], [1], [0], [0], [0, 0, 1, 0], [], []>} : vector<8x16xf32>, vector<8x16xf32>, vector<8x8xf32> -> vector<8x8xf32>
      %137 = tpu.iota {dimensions = array<i32: 1>} : vector<8x8xi32>
      %138 = tpu.iota {dimensions = array<i32: 0>} : vector<8x8xi32>
      %139 = arith.cmpi slt, %137, %138 : vector<8x8xi32>
      %140 = arith.extui %139 : vector<8x8xi1> to vector<8x8xi32>
      %141 = arith.sitofp %140 : vector<8x8xi32> to vector<8x8xf32>
      %cst_65 = arith.constant dense<0.000000e+00> : vector<8x1xf32>
      %142 = tpu.matmul %141, %31, %cst_65 {dimension_numbers = #tpu.dot_dimension_numbers<[1], [0], [0], [1], [0, 0, 1, 1], [], []>} : vector<8x8xf32>, vector<8x1xf32>, vector<8x1xf32> -> vector<8x1xf32>
      %cst_66 = arith.constant 1.000000e+00 : f32
      %143 = vector.broadcast %cst_66 : f32 to vector<8x1xf32>
      %cst_67 = arith.constant dense<0.000000e+00> : vector<8x8xf32>
      %144 = tpu.matmul %31, %31, %cst_67 {dimension_numbers = #tpu.dot_dimension_numbers<[1], [1], [0], [0], [0, 0, 1, 0], [], []>} : vector<8x1xf32>, vector<8x1xf32>, vector<8x8xf32> -> vector<8x8xf32>
      %cst_68 = arith.constant dense<0.000000e+00> : vector<8x8xf32>
      %145 = tpu.matmul %143, %142, %cst_68 {dimension_numbers = #tpu.dot_dimension_numbers<[1], [1], [0], [0], [0, 0, 1, 0], [], []>} : vector<8x1xf32>, vector<8x1xf32>, vector<8x8xf32> -> vector<8x8xf32>
      %cst_69 = arith.constant dense<0.000000e+00> : vector<8x8xf32>
      %146 = tpu.matmul %142, %143, %cst_69 {dimension_numbers = #tpu.dot_dimension_numbers<[1], [1], [0], [0], [0, 0, 1, 0], [], []>} : vector<8x1xf32>, vector<8x1xf32>, vector<8x8xf32> -> vector<8x8xf32>
      %147 = arith.subf %145, %146 : vector<8x8xf32>
      %cst_70 = arith.constant 0.000000e+00 : f32
      %148 = vector.broadcast %cst_70 : f32 to vector<8x8xf32>
      %149 = arith.maximumf %147, %148 : vector<8x8xf32>
      %150 = arith.mulf %144, %149 : vector<8x8xf32>
      %151 = arith.mulf %150, %136 : vector<8x8xf32>
      %cst_71 = arith.constant dense<0.000000e+00> : vector<8xf32>
      %152 = vector.multi_reduction <add>, %151, %cst_71 [1] : vector<8x8xf32> to vector<8xf32>
      %153 = vector.shape_cast %152 : vector<8xf32> to vector<8x1xf32>
      %cst_72 = arith.constant dense<0.000000e+00> : vector<1xf32>
      %154 = vector.multi_reduction <add>, %153, %cst_72 [0] : vector<8x1xf32> to vector<1xf32>
      %155 = vector.shape_cast %154 : vector<1xf32> to vector<1x1xf32>
      %c80 = arith.constant 80 : index
      %c0_73 = arith.constant 0 : index
      %156 = vector.load %arg3[%c80, %c0_73] : memref<120x128xf32, #tpu.memory_space<vmem>>, vector<8x128xf32>
      %c88 = arith.constant 88 : index
      %c0_74 = arith.constant 0 : index
      %157 = vector.load %arg3[%c88, %c0_74] : memref<120x128xf32, #tpu.memory_space<vmem>>, vector<8x128xf32>
      %c96 = arith.constant 96 : index
      %c0_75 = arith.constant 0 : index
      %158 = vector.load %arg3[%c96, %c0_75] : memref<120x128xf32, #tpu.memory_space<vmem>>, vector<1x128xf32>
      %c104 = arith.constant 104 : index
      %c0_76 = arith.constant 0 : index
      %159 = vector.load %arg3[%c104, %c0_76] : memref<120x128xf32, #tpu.memory_space<vmem>>, vector<1x128xf32>
      %c112 = arith.constant 112 : index
      %c0_77 = arith.constant 0 : index
      %160 = vector.load %arg3[%c112, %c0_77] : memref<120x128xf32, #tpu.memory_space<vmem>>, vector<1x128xf32>
      %cst_78 = arith.constant dense<0.000000e+00> : vector<1x128xf32>
      %161 = tpu.matmul %121, %156, %cst_78 {dimension_numbers = #tpu.dot_dimension_numbers<[1], [0], [0], [1], [0, 0, 1, 1], [], []>} : vector<1x8xf32>, vector<8x128xf32>, vector<1x128xf32> -> vector<1x128xf32>
      %cst_79 = arith.constant dense<0.000000e+00> : vector<1x128xf32>
      %162 = tpu.matmul %102, %157, %cst_79 {dimension_numbers = #tpu.dot_dimension_numbers<[1], [0], [0], [1], [0, 0, 1, 1], [], []>} : vector<1x8xf32>, vector<8x128xf32>, vector<1x128xf32> -> vector<1x128xf32>
      %163 = arith.addf %161, %162 : vector<1x128xf32>
      %164 = vector.broadcast %125 : vector<1x1xf32> to vector<1x128xf32>
      %165 = arith.mulf %164, %158 : vector<1x128xf32>
      %166 = arith.addf %163, %165 : vector<1x128xf32>
      %167 = vector.broadcast %155 : vector<1x1xf32> to vector<1x128xf32>
      %168 = arith.mulf %167, %159 : vector<1x128xf32>
      %169 = arith.addf %166, %168 : vector<1x128xf32>
      %170 = arith.addf %169, %160 : vector<1x128xf32>
      %cst_80 = arith.constant 0.000000e+00 : f32
      %171 = vector.broadcast %cst_80 : f32 to vector<1x128xf32>
      %172 = arith.maximumf %170, %171 : vector<1x128xf32>
      %c0_81 = arith.constant 0 : index
      %c0_82 = arith.constant 0 : index
      %173 = vector.load %arg4[%c0_81, %c0_82] : memref<1x128xf32, #tpu.memory_space<vmem>>, vector<1x128xf32>
      tpu.vector_store %arg4[%c0_81, %c0_82], %172 {strides = array<i32>} : memref<1x128xf32, #tpu.memory_space<vmem>>, vector<1x128xf32>,
    } else {
    }
    return
  }
  func.func @transform_0(%arg0: i32) -> (i32, i32) {
    %c0_i32 = arith.constant 0 : i32
    %c0_i32_0 = arith.constant 0 : i32
    return %c0_i32, %arg0 : i32, i32
  }
  func.func @transform_1(%arg0: i32) -> (i32, i32) {
    %c0_i32 = arith.constant 0 : i32
    %c0_i32_0 = arith.constant 0 : i32
    return %arg0, %c0_i32 : i32, i32
  }
  func.func @transform_2(%arg0: i32) -> (i32, i32) {
    %c0_i32 = arith.constant 0 : i32
    %c0_i32_0 = arith.constant 0 : i32
    %c0_i32_1 = arith.constant 0 : i32
    return %c0_i32, %c0_i32_0 : i32, i32
  }
  func.func @transform_3(%arg0: i32) -> (i32, i32) {
    %c0_i32 = arith.constant 0 : i32
    %c0_i32_0 = arith.constant 0 : i32
    %c0_i32_1 = arith.constant 0 : i32
    return %c0_i32, %c0_i32_0 : i32, i32
  }
}

</mosaic_0001>

<bundles_post_ra>
// kernel: task_encoder_forward.1
= control target key start
LH: loop header
LB: loop body
LE: loop exit
PB: predicated region body
PF: predicated region fallthrough
CT: control target
= control target key end

     0   :  { %s1787_s12 = smov 0   ;;  %s1993_s0 = inlined_call_operand.vmem [shape: s32[1,1024], index: 0, kind: input, shape index: {}]   ;;  %s1994_s1 = inlined_call_operand.vmem [shape: f32[1024,16], index: 1, kind: input, shape index: {}]   ;;  %s1995_s2 = inlined_call_operand.vmem [shape: f32[120,128], index: 2, kind: input, shape index: {}]   ;;  %s1996_s3 = inlined_call_operand.vmem [shape: f32[1,128], index: 3, kind: output, shape index: {}]  }
   0x1 LB: > { %s1793_s13 = sadd.s32 4294967295, %s1757_s12   ;;  %p1460_p0 = scmp.ge.s32.totalorder %s1757_s12, 1  ;;  %s1757_s12 = sphi %s1787_s12, %s13_s12  }
   0x2   : > { %p143_p1 = scmp.lt.s32.totalorder %s1757_s12, 5 }
   0x4   : > { %p144_p2 = pnand %p1460_p0, %p143_p1 }
   0x5   : > { %s1461_s14 = sshll.u32 (!%p144_p2), %s1793_s13, 1  ;;  %s1462_s15 = sshll.u32 (!%p144_p2), %s1793_s13, 5 }
   0x6   : > { %147 = sbr.rel (%p144_p2) target bundleno = 1389 (0x56d), region = 32  ;;  %p167_p3 = scmp.lt.s32.totalorder (!%p144_p2), %s1461_s14, 7 }
   0x7   : > { %p172_p4 = scmp.lt.s32.totalorder (!%p144_p2), %s1462_s15, 127  ;;  %p1464_p5 = scmp.ne.s32.totalorder (!%p144_p2), %s1793_s13, 0 }
   0xd   : > { %s1998_s14 = smov (!%p167_p3, %s1461_s14), 7  ;;  %s2000_s15 = smov (!%p172_p4, %s1462_s15), 127 }
   0xe   : > { %s169_s18 = scalar_lea.vmem %s1993_s0, %s1998_s14  ;;  %s1463_s19 = sshll.u32 %s2000_s15, 3  ;;  %vm181_vm0 = vcmask (!%p1464_p5), 7168   ;;  %vm183_vm1 = vcmask (!%p1464_p5), 130048   ;;  %v1759_v0 = vmov (!%p1464_p5), 0.0  }
   0xf   : > { %s1808_s22 = scalar_lea.vmem %s1994_s1, %s1463_s19  ;;  %180 = sbr.rel (%p1464_p5) target bundleno = 22 (0x16), region = 36  ;;  %182 = vst.msk [vmem:[#allocation2] sm:$0xff] (!%p1464_p5), %vm181_vm0, %v1759_v0 }
  0x10   : > { %184 = vst.msk [vmem:[#allocation3] sm:$0xff] (!%p1464_p5), %vm183_vm1, %v1759_v0  ;;  %185 = vst.msk [vmem:[#allocation4] sm:$0xff] (!%p1464_p5), %vm183_vm1, %v1759_v0 }
  0x16 PF: > { %v226_v1 = vld [vmem:[%s1808_s22 + $0x80] sm:$0xff]  ;;  %v227_v2 = vld [vmem:[%s1808_s22 + $0x88] sm:$0xff]  ;;  %v228_v9 = vld [vmem:[%s1808_s22 + $0x90] sm:$0xff]  ;;  %v187_v44 = vlaneseq  ;;  %vm208_vm4 = vcmask 7168   ;;  %vm346_vm5 = vcmask 130048   ;;  %p1471_p6 = scmp.ne.s32.totalorder %s1793_s13, 3 }
  0x17   : > { %v210_v3 = vld [vmem:[%s1808_s22] sm:$0xff]  ;;  %v1651_v4 = vpack.c.bf16 %v227_v2, %v226_v1  ;;  %v211_v5 = vld [vmem:[%s1808_s22 + $0x8] sm:$0xff]  ;;  %v258_v6 = vmul.f32 %v226_v1, %v226_v1  ;;  %v259_v7 = vmul.f32 %v227_v2, %v227_v2  ;;  %v229_v10 = vld [vmem:[%s1808_s22 + $0x98] sm:$0xff]  ;;  %v260_v16 = vmul.f32 %v228_v9, %v228_v9 }
  0x18   : > { %v242_v8 = vmul.f32 %v210_v3, %v210_v3  ;;  %v1653_v11 = vpack.c.bf16 %v211_v5, %v210_v3  ;;  %v243_v12 = vmul.f32 %v211_v5, %v211_v5  ;;  %v1655_v13 = vpack.c.bf16 %v229_v10, %v228_v9  ;;  %v212_v14 = vld [vmem:[%s1808_s22 + $0x10] sm:$0xff]  ;;  %v213_v15 = vld [vmem:[%s1808_s22 + $0x18] sm:$0xff]  ;;  %v230_v17 = vld [vmem:[%s1808_s22 + $0xa0] sm:$0xff] }
  0x19   : > { %1652 = vmatprep.subr.bf16.mxu0 %v1651_v4  ;;  %v1683_v18 = vpack.c.bf16 %v259_v7, %v258_v6  ;;  %v261_v19 = vmul.f32 %v229_v10, %v229_v10  ;;  %v244_v20 = vmul.f32 %v212_v14, %v212_v14  ;;  %v231_v21 = vld [vmem:[%s1808_s22 + $0xa8] sm:$0xff]  ;;  %v214_v22 = vld [vmem:[%s1808_s22 + $0x20] sm:$0xff]  ;;  %v1657_v25 = vpack.c.bf16 %v213_v15, %v212_v14  ;;  %v232_v28 = vld [vmem:[%s1808_s22 + $0xb0] sm:$0xff] }
  0x1a   : > { %v215_v23 = vld [vmem:[%s1808_s22 + $0x28] sm:$0xff]  ;;  %1654 = vmatpush3.bf16.msra.mxu0 %v1653_v11  ;;  %v1685_v24 = vpack.c.bf16 %v243_v12, %v242_v8  ;;  %v245_v26 = vmul.f32 %v213_v15, %v213_v15  ;;  %v1659_v27 = vpack.c.bf16 %v231_v21, %v230_v17  ;;  %v233_v29 = vld [vmem:[%s1808_s22 + $0xb8] sm:$0xff]  ;;  %v262_v31 = vmul.f32 %v230_v17, %v230_v17  ;;  %v216_v37 = vld [vmem:[%s1808_s22 + $0x30] sm:$0xff] }
  0x1b   : > { %1684 = vmatprep.subr.bf16.mxu1 %v1683_v18  ;;  %1656 = vmatprep.subr.bf16.mxu0 %v1655_v13  ;;  %v1687_v30 = vpack.c.bf16 %v261_v19, %v260_v16  ;;  %v263_v32 = vmul.f32 %v231_v21, %v231_v21  ;;  %v246_v34 = vmul.f32 %v214_v22, %v214_v22  ;;  %v217_v38 = vld [vmem:[%s1808_s22 + $0x38] sm:$0xff]  ;;  %v234_v42 = vld [vmem:[%s1808_s22 + $0xc0] sm:$0xff]  ;;  %v235_v43 = vld [vmem:[%s1808_s22 + $0xc8] sm:$0xff]  ;;  %v1834_v57 = vshrl.u32 %v187_v44, 7 }
  0x1c   : > { %1686 = vmatpush3.bf16.msra.mxu1 %v1685_v24  ;;  %v1689_v33 = vpack.c.bf16 %v245_v26, %v244_v20  ;;  %v247_v35 = vmul.f32 %v215_v23, %v215_v23  ;;  %v264_v39 = vmul.f32 %v232_v28, %v232_v28  ;;  %v265_v40 = vmul.f32 %v233_v29, %v233_v29  ;;  %v218_v50 = vld [vmem:[%s1808_s22 + $0x40] sm:$0xff]  ;;  %v219_v51 = vld [vmem:[%s1808_s22 + $0x48] sm:$0xff]  ;;  %v236_v55 = vld [vmem:[%s1808_s22 + $0xd0] sm:$0xff] }
  0x1d   : > { %1688 = vmatprep.subr.bf16.mxu1 %v1687_v30  ;;  %v1691_v36 = vpack.c.bf16 %v263_v32, %v262_v31  ;;  %v1661_v41 = vpack.c.bf16 %v215_v23, %v214_v22  ;;  %v1663_v45 = vpack.c.bf16 %v233_v29, %v232_v28  ;;  %v248_v47 = vmul.f32 %v216_v37, %v216_v37  ;;  %v237_v56 = vld [vmem:[%s1808_s22 + $0xd8] sm:$0xff]  ;;  %v220_v63 = vld [vmem:[%s1808_s22 + $0x50] sm:$0xff]  ;;  %v186_v3 = vld [vmem:[%s169_s18] sm:$0x3] }
  0x1e   : > { %1658 = vmatpush3.bf16.msra.mxu0 %v1657_v25  ;;  %v1693_v46 = vpack.c.bf16 %v247_v35, %v246_v34  ;;  %v249_v48 = vmul.f32 %v217_v38, %v217_v38  ;;  %v1695_v49 = vpack.c.bf16 %v265_v40, %v264_v39  ;;  %v266_v52 = vmul.f32 %v234_v42, %v234_v42  ;;  %v221_v0 = vld [vmem:[%s1808_s22 + $0x58] sm:$0xff]  ;;  %v238_v5 = vld [vmem:[%s1808_s22 + $0xe0] sm:$0xff]  ;;  %v239_v6 = vld [vmem:[%s1808_s22 + $0xe8] sm:$0xff] }
  0x1f   : > { %1660 = vmatprep.subr.bf16.mxu0 %v1659_v27  ;;  %v267_v53 = vmul.f32 %v235_v43, %v235_v43  ;;  %v1665_v54 = vpack.c.bf16 %v217_v38, %v216_v37  ;;  %v1667_v58 = vpack.c.bf16 %v235_v43, %v234_v42  ;;  %v250_v60 = vmul.f32 %v218_v50, %v218_v50  ;;  %v222_v15 = vld [vmem:[%s1808_s22 + $0x60] sm:$0xff]  ;;  %v223_v16 = vld [vmem:[%s1808_s22 + $0x68] sm:$0xff]  ;;  %v240_v21 = vld [vmem:[%s1808_s22 + $0xf0] sm:$0xff] }
  0x20   : > { %1690 = vmatpush3.bf16.msra.mxu1 %v1689_v33  ;;  %v1697_v59 = vpack.c.bf16 %v249_v48, %v248_v47  ;;  %v251_v61 = vmul.f32 %v219_v51, %v219_v51  ;;  %v268_v1 = vmul.f32 %v236_v55, %v236_v55  ;;  %v269_v2 = vmul.f32 %v237_v56, %v237_v56  ;;  %v241_v22 = vld [vmem:[%s1808_s22 + $0xf8] sm:$0xff]  ;;  %v224_v32 = vld [vmem:[%s1808_s22 + $0x70] sm:$0xff] }
  0x21   : > { %1692 = vmatprep.subr.bf16.mxu1 %v1691_v36  ;;  %v1699_v62 = vpack.c.bf16 %v267_v53, %v266_v52  ;;  %v1669_v4 = vpack.c.bf16 %v219_v51, %v218_v50  ;;  %v195_v7 = vsub.s32 1, %v1834_v57  ;;  %v1671_v8 = vpack.c.bf16 %v237_v56, %v236_v55  ;;  %v225_v33 = vld [vmem:[%s1808_s22 + $0x78] sm:$0xff]  ;;  %v274_v50 = vld [vmem:[#allocation3] sm:$0xff] }
  0x22   : > { %1662 = vmatpush3.bf16.msra.mxu0 %v1661_v41  ;;  %v191_v9 = vsub.s32 0, %v1834_v57  ;;  %v1701_v10 = vpack.c.bf16 %v251_v61, %v250_v60  ;;  %v252_v11 = vmul.f32 %v220_v63, %v220_v63  ;;  %v253_v12 = vmul.f32 %v221_v0, %v221_v0  ;;  %v476_v61 = vld [vmem:[%s1995_s2 + $0x10] sm:$0xff] (!%p1471_p6) }
  0x23   : > { %1664 = vmatprep.subr.bf16.mxu0 %v1663_v45  ;;  %v196_v13 = vrot.slane %v186_v3, %v195_v7  ;;  %v1703_v14 = vpack.c.bf16 %v269_v2, %v268_v1  ;;  %v270_v17 = vmul.f32 %v238_v5, %v238_v5  ;;  %v271_v18 = vmul.f32 %v239_v6, %v239_v6 }
  0x24   : > { %1694 = vmatpush3.bf16.msra.mxu1 %v1693_v46  ;;  %v192_v19 = vrot.slane %v186_v3, %v191_v9  ;;  %v1673_v20 = vpack.c.bf16 %v221_v0, %v220_v63  ;;  %v1675_v23 = vpack.c.bf16 %v239_v6, %v238_v5  ;;  %v1760_v24 = vmov 1.0   ;;  %v203_v46 = vld [vmem:[#allocation2] sm:$0xff] }
  0x25   : > { %1696 = vmatprep.subr.bf16.mxu1 %v1695_v49  ;;  %vm198_vm2 = vcmp.eq.s32.totalorder %v196_v13, %v1834_v57  ;;  %v1761_v25 = vmov 0.0   ;;  %v1705_v27 = vpack.c.bf16 %v253_v12, %v252_v11  ;;  %v254_v28 = vmul.f32 %v222_v15, %v222_v15 }
  0x26   : > { %1666 = vmatpush3.bf16.msra.mxu0 %v1665_v54  ;;  %1467 = vmatprep.mubr.msk.f32.mxu0 %vm198_vm2, %v1760_v24  ;;  %vm197_vm3 = vcmp.eq.s32.totalorder %v192_v19, %v1834_v57  ;;  %v1466_v26 = vsel %vm198_vm2, 1.0, %v1761_v25  ;;  %v255_v29 = vmul.f32 %v223_v16, %v223_v16  ;;  %v1707_v31 = vpack.c.bf16 %v271_v18, %v270_v17  ;;  %v348_v54 = vld [vmem:[#allocation4] sm:$0xff] }
  0x27   : > { %1668 = vmatprep.subr.bf16.mxu0 %v1667_v58  ;;  %1469 = vmatprep.mubr.msk.f32.mxu1 %vm198_vm2, %v1760_v24  ;;  %v1465_v30 = vsel %vm197_vm3, 1.0, %v1761_v25  ;;  %v272_v34 = vmul.f32 %v240_v21, %v240_v21  ;;  %v273_v35 = vmul.f32 %v241_v22, %v241_v22  ;;  %v1677_v37 = vpack.c.bf16 %v223_v16, %v222_v15 }
  0x28   : > { %1698 = vmatpush3.bf16.msra.mxu1 %v1697_v59  ;;  %v204_v36 = vadd.f32 %v1466_v26, %v1465_v30  ;;  %v1679_v38 = vpack.c.bf16 %v241_v22, %v240_v21  ;;  %v1709_v39 = vpack.c.bf16 %v255_v29, %v254_v28  ;;  %v256_v40 = vmul.f32 %v224_v32, %v224_v32  ;;  %v474_v22 = vld [vmem:[%s1995_s2] sm:$0xff] (!%p1471_p6) }
  0x29   : > { %1700 = vmatprep.subr.bf16.mxu1 %v1699_v62  ;;  %v257_v41 = vmul.f32 %v225_v33, %v225_v33  ;;  %v1711_v42 = vpack.c.bf16 %v273_v35, %v272_v34  ;;  %v1681_v43 = vpack.c.bf16 %v225_v33, %v224_v32  ;;  %v477_v62 = vld [vmem:[%s1995_s2 + $0x18] sm:$0xff] (!%p1471_p6)  ;;  %v1762_v63 = vmov (!%p1471_p6), 0  }
  0x2a   : > { %1670 = vmatpush3.bf16.msra.mxu0 %v1669_v4  ;;  %205 = vadd.xlane.f32.xlu0 %v204_v36  ;;  %v1763_v2 = vmov (!%p1471_p6), 0.0   ;;  %v1764_v4 = vmov (!%p1471_p6), 0.0|0.0   ;;  %v1716_v5 = vpack.c.bf16 (!%p1471_p6), %v477_v62, %v476_v61  ;;  %vm1765_vm8 = vmmov (!%p1471_p6), 0  }
  0x2b   : > { %1672 = vmatprep.subr.bf16.mxu0 %v1671_v8  ;;  %v1713_v45 = vpack.c.bf16 %v257_v41, %v256_v40  ;;  %1737 = vset.pattern.permute.xlu0 (!%p1471_p6), %v1762_v63  ;;  %vm651_vm13 = vcmask (!%p1471_p6), 64512  }
  0x2c   : > { %1702 = vmatpush3.bf16.msra.mxu1 %v1701_v10  ;;  %1738 = vset.pattern.permute.xlu1 (!%p1471_p6), %v1762_v63 }
  0x2d   : > { %1704 = vmatprep.subr.bf16.mxu1 %v1703_v14 }
  0x2e   : > { %1674 = vmatpush3.bf16.msra.mxu0 %v1673_v20 }
  0x2f   : > { %1676 = vmatprep.subr.bf16.mxu0 %v1675_v23  ;;  %v475_v23 = vld [vmem:[%s1995_s2 + $0x8] sm:$0xff] (!%p1471_p6) }
  0x30   : > { %1706 = vmatpush3.bf16.msra.mxu1 %v1705_v27 }
  0x31   : > { %1708 = vmatprep.subr.bf16.mxu1 %v1707_v31 }
  0x32   : > { %1678 = vmatpush3.bf16.msra.mxu0 %v1677_v37 }
  0x33   : > { %1680 = vmatprep.subr.bf16.mxu0 %v1679_v38 }
  0x34   : > { %1710 = vmatpush3.bf16.msra.mxu1 %v1709_v39 }
  0x35   : > { %1712 = vmatprep.subr.bf16.mxu1 %v1711_v42 }
  0x36   : > { %1682 = vmatpush3.bf16.msra.mxu0 %v1681_v43 }
  0x37   : > { %1715 = vmatprep.subr.bf16.mxu0 (!%p1471_p6), %v1764_v4 }
  0x38   : > { %1714 = vmatpush3.bf16.msra.mxu1 %v1713_v45 }
  0x39   : > { %1468 = vmatmul.mubr.msk.f32.vlgmr.msra.gmra.mrb[0].mxu0 %vm197_vm3, %v1760_v24  ;;  %1718 = vmatprep.subr.bf16.mxu1 (!%p1471_p6), %v1764_v4 }
  0x3a   : > { %1717 = vmatpush3.bf16.msra.mxu0 (!%p1471_p6), %v1716_v5  ;;  %1596 = vmatprep.mubr.msk.f32.mxu0 (!%p1471_p6), %vm1765_vm8, %v1763_v2 }
  0x3b   : > { %1470 = vmatmul.mubr.msk.f32.vlgmr.msra.gmra.mrb[0].mxu1 %vm197_vm3, %v1760_v24  ;;  %1606 = vmatprep.subr.mxu0 (!%p1471_p6), %v1763_v2  ;;  %v1719_v24 = vpack.c.bf16 (!%p1471_p6), %v475_v23, %v474_v22  ;;  %v1480_v23 = vld [vmem:[%s1995_s2 + $0x48] ss:$0 sm:$0xff] (!%p1471_p6) }
  0x3c   : > { %1603 = vmatprep.mubr.msk.f32.mxu1 (!%p1471_p6), %vm1765_vm8, %v1763_v2 }
  0x3d   : > { %1720 = vmatpush3.bf16.msra.mxu1 (!%p1471_p6), %v1719_v24 }
  0x3e   : > { %1611 = vmatprep.subr.mxu1 (!%p1471_p6), %v1763_v2 }
  0xb7   : > { %v206_v47 = vpop.xlane.xlu0 %205 }
  0xb8   : > { %v207_v48 = vadd.f32 %v206_v47, %v203_v46 }
  0xba   : > { %209 = vst.msk [vmem:[#allocation2] sm:$0xff] %vm208_vm4, %v207_v48 }
  0xc1   : > { %v1865_v60 = vld [vmem:[#allocation2] sm:$0xff] (!%p1471_p6) }
  0xc2   : > { %v436_v0 = vmax.f32 (!%p1471_p6), %v1865_v60, 1.0  ;;  %v1473_v1 = vadd.f32 (!%p1471_p6), -1.0, %v1865_v60  ;;  %vm426_vm6 = vcmp.gt.f32.partialorder (!%p1471_p6), %v1865_v60, 0.0  ;;  %vm460_vm7 = vcmp.gt.f32.partialorder (!%p1471_p6), %v1865_v60, 1.0 }
  0xc3   : > { %v1879_v3 = vsel (!%p1471_p6), %vm426_vm6, 1.0, %v1763_v2  ;;  %v467_v18 = vsel (!%p1471_p6), %vm460_vm7, 1, %v1762_v63 }
  0xc4   : > { %1739 = vrcp.f32 (!%p1471_p6), %v436_v0  ;;  %v440_v6 = vmax.f32 (!%p1471_p6), %v1473_v1, 1.0  ;;  %v429_v7 = vsel (!%p1471_p6), %vm208_vm4, %v1879_v3, 0.0  ;;  %v473_v17 = vmul.f32 (!%p1471_p6), 0.0025062656, %v1473_v1 }
  0xc5   : > { %v430_v8 = vrot.slane (!%p1471_p6), %v429_v7, 4 }
  0xc6   : > { %1741 = vrcp.f32 (!%p1471_p6), %v440_v6  ;;  %v851_v19 = vmul.f32 (!%p1471_p6), %v1879_v3, %v473_v17 }
  0xc7   : > { %v431_v9 = vadd.f32 (!%p1471_p6), %v430_v8, %v429_v7  ;;  %v1477_v7 = vld [vmem:[%s1995_s2 + $0x28] ss:$0 sm:$0xff] (!%p1471_p6) }
  0xc8   : > { %v852_v20 = vsel (!%p1471_p6), %vm208_vm4, %v851_v19, 0.0 }
  0xc9   : > { %v432_v10 = vrot.slane (!%p1471_p6), %v431_v9, 2  ;;  %v853_v21 = vrot.slane (!%p1471_p6), %v852_v20, 4 }
  0xcb   : > { %v433_v11 = vadd.f32 (!%p1471_p6), %v432_v10, %v431_v9  ;;  %v854_v25 = vadd.f32 (!%p1471_p6), %v853_v21, %v852_v20 }
  0xcd   : > { %v434_v12 = vrot.slane (!%p1471_p6), %v433_v11, 1  ;;  %v855_v27 = vrot.slane (!%p1471_p6), %v854_v25, 2 }
  0xce   : > { %v1740_v13 = vpop.eup (!%p1471_p6), %1739 }
  0xcf   : > { %446 = vperm.xlu0 (!%p1471_p6), %1737, %v1740_v13   ;;  %v435_v14 = vadd.f32 (!%p1471_p6), %v434_v12, %v433_v11  ;;  %v856_v29 = vadd.f32 (!%p1471_p6), %v855_v27, %v854_v25  ;;  %v645_v13 = vld [vmem:[%s1995_s2 + $0x40] sm:$0xff] (!%p1471_p6) }
  0xd0   : > { %v1742_v15 = vpop.eup (!%p1471_p6), %1741 }
  0xd1   : > { %463 = vperm.xlu1 (!%p1471_p6), %1738, %v1742_v15   ;;  %v803_v16 = vmax.f32 (!%p1471_p6), %v435_v14, 1.0  ;;  %v1482_v26 = vadd.f32 (!%p1471_p6), -1.0, %v435_v14  ;;  %v857_v31 = vrot.slane (!%p1471_p6), %v856_v29, 1  ;;  %vm835_vm9 = vcmp.gt.f32.partialorder (!%p1471_p6), %v435_v14, 1.0  ;;  %v1478_v15 = vld [vmem:[%s1995_s2 + $0x38] ss:$0 sm:$0xff] (!%p1471_p6) }
  0xd2   : > { %v845_v34 = vsel (!%p1471_p6), %vm835_vm9, 1, %v1762_v63  ;;  %v1476_v63 = vld [vmem:[%s1995_s2 + $0x20] ss:$0 sm:$0xff] (!%p1471_p6)  ;;  %v1766_v14 = vmov (!%p1471_p6), 1.0  }
  0xd3   : > { %453 = vperm.xlu0 (!%p1471_p6), %1737, %v1865_v60   ;;  %1743 = vrcp.f32 (!%p1471_p6), %v803_v16  ;;  %v837_v30 = vmax.f32 (!%p1471_p6), %v1482_v26, 1.0  ;;  %v858_v32 = vadd.f32 (!%p1471_p6), %v857_v31, %v856_v29 }
  0xd5   : > { %469 = vperm.xlu1 (!%p1471_p6), %1738, %v467_v18  }
  0xd7   : > { %628 = vperm.xlu0 (!%p1471_p6), %1737, %v473_v17  }
  0xdb   : > { %808 = vperm.xlu0 (!%p1471_p6), %1737, %v1879_v3  }
  0xdd   : > { %v1744_v28 = vpop.eup (!%p1471_p6), %1743 }
  0xde   : > { %v859_v33 = vmul.f32 (!%p1471_p6), %v1744_v28, %v858_v32 }
  0xdf   : > { %821 = vperm.xlu0 (!%p1471_p6), %1737, %v1744_v28   ;;  %v1257_v28 = vld [vmem:[%s1995_s2 + $0x50] sm:$0xff] (!%p1471_p6) }
  0xe3   : > { %840 = vperm.xlu0 (!%p1471_p6), %1737, %v837_v30  }
  0xe7   : > { %847 = vperm.xlu0 (!%p1471_p6), %1737, %v845_v34  }
 0x10c   : > { %v1530_v49 = vpop.f32.mrb[0].mxu0 }
 0x10d   : > { %v1531_v51 = vpop.f32.mrb[1].mxu0 }
 0x10e   : > { %v1532_v52 = vadd.f32 %v1531_v51, %v1530_v49  ;;  %v1565_v53 = vpop.f32.mrb[0].mxu1  ;;  %424 = sbr.rel (%p1471_p6) target bundleno = 1389 (0x56d), region = 40  ;;  %v643_v51 = vld [vmem:[%s1995_s2 + $0x30] sm:$0xff] (!%p1471_p6) }
 0x10f   : > { %v1566_v55 = vpop.f32.mrb[1].mxu1 }
 0x110   : > { %v345_v56 = vadd.f32 %v1532_v52, %v274_v50  ;;  %v1567_v58 = vadd.f32 %v1566_v55, %v1565_v53 }
 0x112   : > { %347 = vst.msk [vmem:[#allocation3] sm:$0xff] %vm346_vm5, %v345_v56  ;;  %v419_v59 = vadd.f32 %v1567_v58, %v348_v54 }
 0x114   : > { %420 = vst.msk [vmem:[#allocation4] sm:$0xff] %vm346_vm5, %v419_v59 }
 0x119   : > { %v443_v35 = vld [vmem:[#allocation3] sm:$0xff] }
 0x11b   : > { %v450_v43 = vld [vmem:[#allocation4] sm:$0xff] }
 0x14e   : > { %v447_v36 = vpop.permute.xlu0 %446 }
 0x14f   : > { %v449_v37 = vmul.f32 %v447_v36, %v443_v35 }
 0x150   : > { %v464_v41 = vpop.permute.xlu1 %463 }
 0x151   : > { %1597 = vmatmul.mubr.msk.f32.vlgmr.msra.gmra.mrb[0].mxu0 %vm346_vm5, %v449_v37  ;;  %v860_v38 = vmul.f32 %v449_v37, %v449_v37 }
 0x152   : > { %v454_v39 = vpop.permute.xlu0 %453  ;;  %1608 = vmatprep.mubr.msk.f32.mxu0 %vm1765_vm8, %v1763_v2  ;;  %1607 = vmatpush3.msra.mxu0 %v643_v51 }
 0x153   : > { %v456_v40 = vmul.f32 %v454_v39, %v449_v37  ;;  %v861_v42 = vsel %vm346_vm5, %v860_v38, 0.0  ;;  %1616 = vmatprep.subr.mxu0 %v1763_v2 }
 0x154   : > { %862 = vadd.xlane.f32.xlu1 %v861_v42  ;;  %v470_v48 = vpop.permute.xlu1 %469 }
 0x155   : > { %v457_v45 = vmul.f32 %v456_v40, %v449_v37  ;;  %vm471_vm10 = vcmp.eq.s32.totalorder %v470_v48, 1 }
 0x156   : > { %v629_v0 = vpop.permute.xlu0 %628 }
 0x157   : > { %v458_v46 = vsub.f32 %v450_v43, %v457_v45  ;;  %v635_v4 = vmul.f32 %v1476_v63, %v629_v0 }
 0x159   : > { %v459_v47 = vmax.f32 %v458_v46, 0.0 }
 0x15a   : > { %v809_v26 = vpop.permute.xlu0 %808 }
 0x15b   : > { %v466_v49 = vmul.f32 %v464_v41, %v459_v47 }
 0x15d   : > { %v472_v50 = vsel %vm471_vm10, %v466_v49, 0.0 }
 0x15e   : > { %1604 = vmatmul.mubr.msk.f32.vlgmr.msra.gmra.mrb[0].mxu1 %vm346_vm5, %v472_v50  ;;  %v822_v39 = vpop.permute.xlu0 %821 }
 0x15f   : > { %1613 = vmatprep.mubr.msk.f32.mxu1 %vm1765_vm8, %v1763_v2  ;;  %1612 = vmatpush3.msra.mxu1 %v645_v13 }
 0x160   : > { %1621 = vmatprep.subr.mxu1 %v1763_v2 }
 0x162   : > { %v841_v45 = vpop.permute.xlu0 %840 }
 0x165   : > { %1410 = vperm.xlu1 %1738, %v859_v33   ;;  %v1258_v33 = vld [vmem:[%s1995_s2 + $0x58] sm:$0xff] }
 0x166   : > { %v848_v51 = vpop.permute.xlu0 %847 }
 0x167   : > { %vm849_vm15 = vcmp.eq.s32.totalorder %v848_v51, 1 }
 0x1e1   : > { %v863_v52 = vpop.xlane.xlu1 %862 }
 0x1e2   : > { %1745 = vrsqrt.f32 %v863_v52  ;;  %vm866_vm11 = vcmp.eq.f32.partialorder %v863_v52, inf  ;;  %v869_v56 = vand.u32 2147483648, %v863_v52  ;;  %vm868_vm12 = vcmp.eq.f32.partialorder %v863_v52, 0.0 }
 0x1ec   : > { %v1746_v53 = vpop.eup %1745 }
 0x1ed   : > { %v865_v54 = vmul.f32 %v1746_v53, %v863_v52 }
 0x1ef   : > { %v867_v55 = vsel %vm866_vm11, %v863_v52, %v865_v54 }
 0x1f0   : > { %v870_v59 = vsel %vm868_vm12, %v869_v56, %v867_v55 }
 0x1f1   : > { %v871_v62 = vmax.f32 %v870_v59, 1e-07 }
 0x1f3   : > { %1747 = vrcp.f32 %v871_v62 }
 0x1f4   : > { %1749 = vrcp.f32 %v841_v45 }
 0x1fd   : > { %v1748_v9 = vpop.eup %1747 }
 0x1fe   : > { %v874_v12 = vmul.f32 %v1748_v9, %v449_v37  ;;  %v1750_v53 = vpop.eup %1749 }
 0x224   : > { %v549_v58 = vpop.f32.mrb[0].mxu0 }
 0x225   : > { %v1598_v61 = vpop.f32.mrb[1].mxu0 }
 0x231   : > { %v622_v1 = vpop.f32.mrb[0].mxu1 }
 0x232   : > { %v623_v5 = vadd.f32 %v622_v1, %v549_v58  ;;  %v1605_v6 = vpop.f32.mrb[1].mxu1 }
 0x234   : > { %v636_v8 = vadd.f32 %v635_v4, %v623_v5 }
 0x236   : > { %v641_v10 = vadd.f32 %v1477_v7, %v636_v8 }
 0x238   : > { %v642_v11 = vmax.f32 %v641_v10, 0.0 }
 0x23a   : > { %1609 = vmatmul.mubr.msk.f32.vlgmr.msra.gmra.mrb[2].mxu0 %vm651_vm13, %v642_v11 }
 0x23b   : > { %1617 = vmatpush3.xpose.msk.msra.mxu0 %vm346_vm5, %v874_v12  ;;  %1618 = vmatprep.mubr.msk.f32.mxu0 %vm1765_vm8, %v1763_v2 }
 0x23c   : > { %1626 = vmatprep.subr.mxu0 %v1763_v2 }
 0x23e   : > { %1619 = vmatmul.mubr.msk.f32.vlgmr.msra.gmra.mrb[4].mxu0 %vm346_vm5, %v874_v12 }
 0x23f   : > { %1627 = vmatpush3.xpose.msk.msra.mxu0 %vm208_vm4, %v1879_v3  ;;  %1628 = vmatprep.mubr.msk.f32.mxu0 %vm1765_vm8, %v1763_v2 }
 0x240   : > { %1636 = vmatprep.subr.mxu0 %v1763_v2 }
 0x242   : > { %1629 = vmatmul.mubr.msk.f32.vlgmr.msra.gmra.mrb[6].mxu0 %vm208_vm4, %v1879_v3  ;;  %v949_v3 = vand.u32 127, %v187_v44 }
 0x243   : > { %1638 = vmatprep.mubr.msk.f32.mxu0 %vm1765_vm8, %v1763_v2  ;;  %1637 = vmatpush3.xpose.msk.msra.mxu0 %vm208_vm4, %v1766_v14 }
 0x244   : > { %1646 = vmatprep.subr.mxu0 %v1763_v2  ;;  %vm950_vm14 = vcmp.lt.s32.totalorder %v949_v3, %v1834_v57  ;;  %v1411_v3 = vpop.permute.xlu1 %1410 }
 0x245   : > { %v1485_v22 = vsel %vm950_vm14, 1.0, %v1763_v2 }
 0x30d   : > { %v721_v16 = vpop.f32.mrb[2].mxu0 }
 0x30e   : > { %v722_v17 = vadd.f32 %v1478_v15, %v721_v16  ;;  %v1610_v18 = vpop.f32.mrb[3].mxu0  ;;  %v1259_v15 = vld [vmem:[%s1995_s2 + $0x60] sm:$0x1] }
 0x30f   : > { %v1413_v18 = vmul.f32 %v1411_v3, %v1259_v15 }
 0x310   : > { %v725_v19 = vmax.f32 %v722_v17, 0.0  ;;  %v1260_v17 = vld [vmem:[%s1995_s2 + $0x68] sm:$0x1] }
 0x311   : > { %v1943_v20 = vpop.f32.mrb[4].mxu0 }
 0x312   : > { %1614 = vmatmul.mubr.msk.f32.vlgmr.msra.gmra.mrb[2].mxu1 %vm651_vm13, %v725_v19  ;;  %v1620_v21 = vpop.f32.mrb[5].mxu0 }
 0x313   : > { %1622 = vmatpush3.msk.msra.mxu1 %vm426_vm6, %v1766_v14  ;;  %1623 = vmatprep.mubr.msk.f32.mxu1 %vm1765_vm8, %v1763_v2 }
 0x314   : > { %1631 = vmatprep.subr.mxu1 %v1763_v2 }
 0x315   : > { %v1094_v44 = vpop.f32.mrb[6].mxu0 }
 0x316   : > { %1624 = vmatmul.mubr.msk.f32.vlgmr.msra.gmra.mrb[4].mxu1 %vm651_vm13, %v1485_v22  ;;  %v1630_v57 = vpop.f32.mrb[7].mxu0  ;;  %v1261_v22 = vld [vmem:[%s1995_s2 + $0x70] sm:$0x1] }
 0x317   : > { %1633 = vmatprep.mubr.msk.f32.mxu1 %vm1765_vm8, %v1763_v2 }
 0x3e5   : > { %v799_v60 = vpop.f32.mrb[2].mxu1 }
 0x3e6   : > { %v800_v24 = vadd.f32 %v1480_v23, %v799_v60  ;;  %v1615_v25 = vpop.f32.mrb[3].mxu1 }
 0x3e8   : > { %v811_v27 = vmul.f32 %v809_v26, %v800_v24 }
 0x3e9   : > { %v1022_v29 = vpop.f32.mrb[4].mxu1 }
 0x3ea   : > { %v812_v30 = vsel %vm651_vm13, %v811_v27, 0.0  ;;  %v1625_v31 = vpop.f32.mrb[5].mxu1  ;;  %1632 = vmatpush3.xpose.msk.msra.mxu1 %vm208_vm4, %v1022_v29  ;;  %1639 = vmatmul.mubr.msk.f32.vlgmr.msra.gmra.mrb[8].mxu0 %vm208_vm4, %v1022_v29 }
 0x3eb   : > { %v813_v32 = vrot.slane %v812_v30, 4  ;;  %1641 = vmatprep.subr.mxu1 %v1763_v2  ;;  %1647 = vmatpush3.msra.mxu0 %v1257_v28 }
 0x3ec   : > { %1648 = vmatprep.mubr.msk.f32.mxu0 %vm1765_vm8, %v1763_v2 }
 0x3ed   : > { %v814_v34 = vadd.f32 %v813_v32, %v812_v30  ;;  %1634 = vmatmul.mubr.msk.f32.vlgmr.msra.gmra.mrb[6].mxu1 %vm208_vm4, %v1766_v14 }
 0x3ee   : > { %1642 = vmatpush3.msra.mxu1 %v1258_v33  ;;  %1643 = vmatprep.mubr.msk.f32.mxu1 %vm1765_vm8, %v1763_v2 }
 0x3ef   : > { %v815_v35 = vrot.slane %v814_v34, 2 }
 0x3f1   : > { %v816_v36 = vadd.f32 %v815_v35, %v814_v34 }
 0x3f3   : > { %v817_v37 = vrot.slane %v816_v36, 1 }
 0x3f5   : > { %v818_v38 = vadd.f32 %v817_v37, %v816_v36 }
 0x3f7   : > { %v824_v40 = vmul.f32 %v822_v39, %v818_v38 }
 0x3f9   : > { %v825_v41 = vsub.f32 %v800_v24, %v824_v40  ;;  %1644 = vmatmul.mubr.msk.f32.vlgmr.msra.gmra.mrb[8].mxu1 %vm651_vm13, %v824_v40 }
 0x3fb   : > { %v826_v42 = vmul.f32 %v825_v41, %v809_v26 }
 0x3fd   : > { %v827_v43 = vmul.f32 %v826_v42, %v825_v41 }
 0x3ff   : > { %v828_v46 = vsel %vm651_vm13, %v827_v43, 0.0 }
 0x400   : > { %v829_v47 = vrot.slane %v828_v46, 4 }
 0x402   : > { %v830_v48 = vadd.f32 %v829_v47, %v828_v46 }
 0x404   : > { %v831_v49 = vrot.slane %v830_v48, 2 }
 0x406   : > { %v832_v50 = vadd.f32 %v831_v49, %v830_v48 }
 0x408   : > { %v833_v2 = vrot.slane %v832_v50, 1 }
 0x40a   : > { %v834_v52 = vadd.f32 %v833_v2, %v832_v50 }
 0x40c   : > { %v844_v54 = vmul.f32 %v1750_v53, %v834_v52 }
 0x40e   : > { %v850_v55 = vsel %vm849_vm15, %v844_v54, 0.0 }
 0x40f   : > { %1649 = vmatmul.mubr.msk.f32.vlgmr.msra.gmra.mrb[10].mxu0 %vm651_vm13, %v850_v55 }
 0x4bd   : > { %v1240_v56 = vpop.f32.mrb[8].mxu0 }
 0x4be   : > { %v1640_v58 = vpop.f32.mrb[9].mxu0 }
 0x4c0   : > { %v1170_v59 = vpop.f32.mrb[6].mxu1 }
 0x4c1   : > { %v1244_v61 = vsub.f32 %v1170_v59, %v1240_v56  ;;  %v1635_v62 = vpop.f32.mrb[7].mxu1 }
 0x4c3   : > { %v1245_v63 = vmax.f32 %v1244_v61, 0.0 }
 0x4c5   : > { %v1246_v0 = vmul.f32 %v1245_v63, %v1094_v44 }
 0x4c7   : > { %v1247_v1 = vmul.f32 %v1246_v0, %v1943_v20 }
 0x4c9   : > { %v1248_v4 = vsel %vm651_vm13, %v1247_v1, 0.0 }
 0x4ca   : > { %1249 = vadd.xlane.f32.xlu0 %v1248_v4 }
 0x4cc   : > { %v1331_v5 = vpop.f32.mrb[8].mxu1 }
 0x4cd   : > { %v1645_v6 = vpop.f32.mrb[9].mxu1 }
 0x4e2   : > { %v1404_v7 = vpop.f32.mrb[10].mxu0 }
 0x4e3   : > { %v1405_v8 = vadd.f32 %v1404_v7, %v1331_v5  ;;  %v1650_v9 = vpop.f32.mrb[11].mxu0 }
 0x4e5   : > { %v1414_v20 = vadd.f32 %v1413_v18, %v1405_v8 }
 0x557   : > { %v1250_v10 = vpop.xlane.xlu0 %1249 }
 0x558   : > { %v1251_v11 = vrot.slane %v1250_v10, 4 }
 0x55a   : > { %v1252_v12 = vadd.f32 %v1251_v11, %v1250_v10 }
 0x55c   : > { %v1253_v13 = vrot.slane %v1252_v12, 2 }
 0x55e   : > { %v1254_v14 = vadd.f32 %v1253_v13, %v1252_v12 }
 0x560   : > { %v1255_v16 = vrot.slane %v1254_v14, 1 }
 0x562   : > { %v1256_v19 = vadd.f32 %v1255_v16, %v1254_v14 }
 0x564   : > { %v1415_v21 = vmul.f32 %v1260_v17, %v1256_v19 }
 0x566   : > { %v1416_v44 = vadd.f32 %v1415_v21, %v1414_v20 }
 0x568   : > { %v1417_v57 = vadd.f32 %v1416_v44, %v1261_v22 }
 0x56a   : > { %v1418_v23 = vmax.f32 %v1417_v57, 0.0 }
 0x56c   : > { %1419 = vst [vmem:[%s1996_s3] sm:$0x1] %v1418_v23 }
 0x56d PF: > { %s13_s12 = sadd.s32 1, %s1757_s12  }
 0x56e   : > { %p10_p7 = scmp.ge.s32.totalorder %s13_s12, 6  }
 0x570   :  { %12 = sbr.rel (!%p10_p7) target bundleno = 1 (0x1), region = 69 }

</bundles_post_ra>
